<compile_context>
chip_gen: v7x
topology: tpu7x:2x2x1
jax: 0.10.0
libtpu: 0.0.40
codegen_flags: <defaults>
</compile_context>

<pallas_src>
import math
from functools import partial

import jax
import jax.numpy as jnp
from jax.experimental import pallas as pl
from jax.experimental.pallas import tpu as pltpu


def _attention_kernel(x_ref, wq_ref, wk_ref, wv_ref, bq_ref, bk_ref, bv_ref,
                      wp_ref, bp_ref, o_ref, acc_ref, *, scale):
    h = pl.program_id(1)

    @pl.when(h == 0)
    def _init():
        acc_ref[...] = jnp.zeros_like(acc_ref)

    x = x_ref[0].astype(wq_ref.dtype)                                   # (N, C)

    # Per-head q/k/v projections (weight slices picked by BlockSpec DMA).
    q = jnp.dot(x, wq_ref[0], preferred_element_type=jnp.float32) + bq_ref[0]
    k = jnp.dot(x, wk_ref[0], preferred_element_type=jnp.float32) + bk_ref[0]
    v = jnp.dot(x, wv_ref[0], preferred_element_type=jnp.float32) + bv_ref[0]

    # Scaled dot-product attention with a numerically stable softmax.
    s = jnp.dot(q, k.T, preferred_element_type=jnp.float32) * scale     # (N, N)
    s = s - jnp.max(s, axis=-1, keepdims=True)
    p = jnp.exp(s)
    p = p / jnp.sum(p, axis=-1, keepdims=True)
    # attn_drop(p=0.0) is the identity -> no-op.
    oh = jnp.dot(p, v, preferred_element_type=jnp.float32)              # (N, Dh)

    # Accumulate this head's slice of the output projection.
    acc_ref[...] += jnp.dot(oh.astype(wp_ref.dtype), wp_ref[0],
                            preferred_element_type=jnp.float32)         # (N, C)

    @pl.when(h == pl.num_programs(1) - 1)
    def _finalize():
        # proj bias added exactly once; proj_drop(p=0.0) is the identity.
        o_ref[0] = (acc_ref[...] + bp_ref[...]).astype(o_ref.dtype)


def attention_forward(x, w_qkv, b_qkv, w_proj, b_proj, *, num_heads,
                      qk_scale=None):
    """ViT Attention forward.

    x:      (B, N, C)
    w_qkv:  (C, 3*C)  qkv weight, stored (in, out) (transposed vs PyTorch)
    b_qkv:  (3*C,)    qkv bias (zeros for qkv_bias=False)
    w_proj: (C, C)    proj weight, stored (in, out)
    b_proj: (C,)      proj bias
    """
    B, N, C = x.shape
    H = num_heads
    assert C % H == 0, "dim must be divisible by num_heads"
    Dh = C // H
    scale = float(qk_scale) if qk_scale is not None else Dh ** -0.5

    # Re-layout weights so each head's slice is a whole-block DMA with
    # full-extent last-two dims (lane-dense, no in-kernel slicing/reshaping).
    wq = w_qkv[:, 0 * C:1 * C].reshape(C, H, Dh).transpose(1, 0, 2)   # (H, C, Dh)
    wk = w_qkv[:, 1 * C:2 * C].reshape(C, H, Dh).transpose(1, 0, 2)   # (H, C, Dh)
    wv = w_qkv[:, 2 * C:3 * C].reshape(C, H, Dh).transpose(1, 0, 2)   # (H, C, Dh)
    bq = b_qkv[0 * C:1 * C].reshape(H, 1, Dh)
    bk = b_qkv[1 * C:2 * C].reshape(H, 1, Dh)
    bv = b_qkv[2 * C:3 * C].reshape(H, 1, Dh)
    wp = w_proj.reshape(H, Dh, C)                                     # (H, Dh, C)
    bp = b_proj.reshape(1, C)

    flops = (2 * B * N * C * 3 * C            # qkv projection
             + 4 * B * H * N * N * Dh         # q@k^T and attn@v
             + 2 * B * N * C * C)             # output projection
    itemsize = int(jnp.dtype(x.dtype).itemsize)
    cost = pl.CostEstimate(
        flops=int(flops),
        transcendentals=int(B * H * N * N),                  # exp in softmax
        bytes_accessed=int(itemsize * (2 * B * N * C + 4 * C * C + 4 * C)))

    head_block = lambda b, h: (h, 0, 0)

    out = pl.pallas_call(
        partial(_attention_kernel, scale=scale),
        out_shape=jax.ShapeDtypeStruct((B, N, C), x.dtype),
        grid_spec=pltpu.PrefetchScalarGridSpec(
            num_scalar_prefetch=0,
            grid=(B, H),
            in_specs=[
                pl.BlockSpec((1, N, C), lambda b, h: (b, 0, 0)),   # x (resident over h)
                pl.BlockSpec((1, C, Dh), head_block),              # wq[h]
                pl.BlockSpec((1, C, Dh), head_block),              # wk[h]
                pl.BlockSpec((1, C, Dh), head_block),              # wv[h]
                pl.BlockSpec((1, 1, Dh), head_block),              # bq[h]
                pl.BlockSpec((1, 1, Dh), head_block),              # bk[h]
                pl.BlockSpec((1, 1, Dh), head_block),              # bv[h]
                pl.BlockSpec((1, Dh, C), head_block),              # w_proj rows for head h
                pl.BlockSpec((1, C), lambda b, h: (0, 0)),         # b_proj
            ],
            out_specs=pl.BlockSpec((1, N, C), lambda b, h: (b, 0, 0)),
            scratch_shapes=[pltpu.VMEM((N, C), jnp.float32)],      # proj accumulator
        ),
        compiler_params=pltpu.CompilerParams(
            dimension_semantics=("parallel", "arbitrary")),
        cost_estimate=cost,
    )(x, wq, wk, wv, bq, bk, bv, wp, bp)
    return out


def init_attention_params(key, dim, num_heads=8, qkv_bias=False,
                          dtype=jnp.float32):
    """Deterministic init mimicking nn.Linear defaults (uniform +/- 1/sqrt(fan_in))."""
    k1, k2, k3, k4 = jax.random.split(key, 4)
    bound = 1.0 / math.sqrt(dim)
    # Stored as (in, out) so kernels compute x @ W (PyTorch stores (out, in)).
    w_qkv = jax.random.uniform(k1, (dim, 3 * dim), dtype, -bound, bound)
    if qkv_bias:
        b_qkv = jax.random.uniform(k2, (3 * dim,), dtype, -bound, bound)
    else:
        b_qkv = jnp.zeros((3 * dim,), dtype)   # module default: qkv_bias=False
    w_proj = jax.random.uniform(k3, (dim, dim), dtype, -bound, bound)
    b_proj = jax.random.uniform(k4, (dim,), dtype, -bound, bound)
    return w_qkv, b_qkv, w_proj, b_proj


def attention_reference(x, w_qkv, b_qkv, w_proj, b_proj, num_heads,
                        qk_scale=None):
    """Pure-JAX reference mirroring the PyTorch module semantics."""
    B, N, C = x.shape
    Dh = C // num_heads
    scale = qk_scale if qk_scale is not None else Dh ** -0.5
    qkv = x @ w_qkv + b_qkv
    qkv = qkv.reshape(B, N, 3, num_heads, Dh).transpose(2, 0, 3, 1, 4)
    q, k, v = qkv[0], qkv[1], qkv[2]                       # (B, H, N, Dh)
    attn = jnp.einsum('bhnd,bhmd->bhnm', q, k) * scale
    attn = jax.nn.softmax(attn, axis=-1)
    out = jnp.einsum('bhnm,bhmd->bhnd', attn, v)
    out = out.transpose(0, 2, 1, 3).reshape(B, N, C)
    return out @ w_proj + b_proj


if __name__ == "__main__":
    key = jax.random.PRNGKey(0)
    kx, kp = jax.random.split(key)

    # Small ViT-like shapes, consistent with the module defaults:
    # batch=2, seq=8, dim=64, num_heads=8 (head_dim=8), qkv_bias=False.
    B, N, C, H = 2, 8, 64, 8

    x = jax.random.normal(kx, (B, N, C), jnp.float32)
    w_qkv, b_qkv, w_proj, b_proj = init_attention_params(
        kp, C, num_heads=H, qkv_bias=False)

    out = attention_forward(x, w_qkv, b_qkv, w_proj, b_proj, num_heads=H)
    out = jax.block_until_ready(out)

    ref = attention_reference(x, w_qkv, b_qkv, w_proj, b_proj, H)
    assert out.shape == (B, N, C)
    assert jnp.allclose(out, ref, atol=1e-5, rtol=1e-5), "mismatch vs reference"

    # TODO(synk): non-zero attn_drop/proj_drop would need pltpu.prng_seed /
    # prng_random_bits; module defaults (0.0) make dropout the identity here.
    print("KERNEL_OK")
</pallas_src>

<mosaic_0001>
module attributes {stable_mosaic.version = 11 : i64} {
  func.func @_attention_kernel(%arg0: i32, %arg1: i32, %arg2: memref<1x8x64xf32, #tpu.memory_space<vmem>>, %arg3: memref<1x64x8xf32, #tpu.memory_space<vmem>>, %arg4: memref<1x64x8xf32, #tpu.memory_space<vmem>>, %arg5: memref<1x64x8xf32, #tpu.memory_space<vmem>>, %arg6: memref<1x1x8xf32, #tpu.memory_space<vmem>>, %arg7: memref<1x1x8xf32, #tpu.memory_space<vmem>>, %arg8: memref<1x1x8xf32, #tpu.memory_space<vmem>>, %arg9: memref<1x8x64xf32, #tpu.memory_space<vmem>>, %arg10: memref<1x64xf32, #tpu.memory_space<vmem>>, %arg11: memref<1x8x64xf32, #tpu.memory_space<vmem>>, %arg12: memref<8x64xf32, #tpu.memory_space<vmem>>) attributes {dimension_semantics = [#tpu.dimension_semantics<parallel>, #tpu.dimension_semantics<arbitrary>], iteration_bounds = array<i64: 2, 8>, scalar_prefetch = 0 : i64, scratch_operands = 1 : i64, tpu.core_type = #tpu.core_type<tc>, window_params = [{transform_indices = @transform_0, window_bounds = array<i64: 1, 8, 64>}, {transform_indices = @transform_1, window_bounds = array<i64: 1, 64, 8>}, {transform_indices = @transform_2, window_bounds = array<i64: 1, 64, 8>}, {transform_indices = @transform_3, window_bounds = array<i64: 1, 64, 8>}, {transform_indices = @transform_4, window_bounds = array<i64: 1, 1, 8>}, {transform_indices = @transform_5, window_bounds = array<i64: 1, 1, 8>}, {transform_indices = @transform_6, window_bounds = array<i64: 1, 1, 8>}, {transform_indices = @transform_7, window_bounds = array<i64: 1, 8, 64>}, {pipeline_mode = #tpu.pipeline_mode<synchronous>, transform_indices = @transform_8, window_bounds = array<i64: 1, 64>}, {transform_indices = @transform_9, window_bounds = array<i64: 1, 8, 64>}]} {
    %c0_i32 = arith.constant 0 : i32
    %0 = arith.cmpi eq, %arg1, %c0_i32 : i32
    %1 = arith.extui %0 : i1 to i32
    %c0_i32_0 = arith.constant 0 : i32
    %2 = arith.cmpi ne, %1, %c0_i32_0 : i32
    scf.if %2 {
      %cst_37 = arith.constant 0.000000e+00 : f32
      %49 = vector.broadcast %cst_37 : f32 to vector<8x64xf32>
      %c0_38 = arith.constant 0 : index
      %c0_39 = arith.constant 0 : index
      %50 = vector.load %arg12[%c0_38, %c0_39] : memref<8x64xf32, #tpu.memory_space<vmem>>, vector<8x64xf32>
      tpu.vector_store %arg12[%c0_38, %c0_39], %49 {strides = array<i32>} : memref<8x64xf32, #tpu.memory_space<vmem>>, vector<8x64xf32>,
    } else {
    }
    %c0 = arith.constant 0 : index
    %c0_1 = arith.constant 0 : index
    %c0_2 = arith.constant 0 : index
    %3 = vector.load %arg2[%c0, %c0_1, %c0_2] : memref<1x8x64xf32, #tpu.memory_space<vmem>>, vector<1x8x64xf32>
    %4 = vector.shape_cast %3 : vector<1x8x64xf32> to vector<8x64xf32>
    %c0_3 = arith.constant 0 : index
    %c0_4 = arith.constant 0 : index
    %c0_5 = arith.constant 0 : index
    %5 = vector.load %arg3[%c0_3, %c0_4, %c0_5] : memref<1x64x8xf32, #tpu.memory_space<vmem>>, vector<1x64x8xf32>
    %6 = vector.shape_cast %5 : vector<1x64x8xf32> to vector<64x8xf32>
    %cst = arith.constant dense<0.000000e+00> : vector<8x8xf32>
    %7 = tpu.matmul %4, %6, %cst {dimension_numbers = #tpu.dot_dimension_numbers<[1], [0], [0], [1], [0, 0, 1, 1], [], []>} : vector<8x64xf32>, vector<64x8xf32>, vector<8x8xf32> -> vector<8x8xf32>
    %c0_6 = arith.constant 0 : index
    %c0_7 = arith.constant 0 : index
    %c0_8 = arith.constant 0 : index
    %8 = vector.load %arg6[%c0_6, %c0_7, %c0_8] : memref<1x1x8xf32, #tpu.memory_space<vmem>>, vector<1x1x8xf32>
    %9 = vector.shape_cast %8 : vector<1x1x8xf32> to vector<1x8xf32>
    %10 = vector.broadcast %9 : vector<1x8xf32> to vector<8x8xf32>
    %11 = arith.addf %7, %10 : vector<8x8xf32>
    %c0_9 = arith.constant 0 : index
    %c0_10 = arith.constant 0 : index
    %c0_11 = arith.constant 0 : index
    %12 = vector.load %arg4[%c0_9, %c0_10, %c0_11] : memref<1x64x8xf32, #tpu.memory_space<vmem>>, vector<1x64x8xf32>
    %13 = vector.shape_cast %12 : vector<1x64x8xf32> to vector<64x8xf32>
    %cst_12 = arith.constant dense<0.000000e+00> : vector<8x8xf32>
    %14 = tpu.matmul %4, %13, %cst_12 {dimension_numbers = #tpu.dot_dimension_numbers<[1], [0], [0], [1], [0, 0, 1, 1], [], []>} : vector<8x64xf32>, vector<64x8xf32>, vector<8x8xf32> -> vector<8x8xf32>
    %c0_13 = arith.constant 0 : index
    %c0_14 = arith.constant 0 : index
    %c0_15 = arith.constant 0 : index
    %15 = vector.load %arg7[%c0_13, %c0_14, %c0_15] : memref<1x1x8xf32, #tpu.memory_space<vmem>>, vector<1x1x8xf32>
    %16 = vector.shape_cast %15 : vector<1x1x8xf32> to vector<1x8xf32>
    %17 = vector.broadcast %16 : vector<1x8xf32> to vector<8x8xf32>
    %18 = arith.addf %14, %17 : vector<8x8xf32>
    %c0_16 = arith.constant 0 : index
    %c0_17 = arith.constant 0 : index
    %c0_18 = arith.constant 0 : index
    %19 = vector.load %arg5[%c0_16, %c0_17, %c0_18] : memref<1x64x8xf32, #tpu.memory_space<vmem>>, vector<1x64x8xf32>
    %20 = vector.shape_cast %19 : vector<1x64x8xf32> to vector<64x8xf32>
    %cst_19 = arith.constant dense<0.000000e+00> : vector<8x8xf32>
    %21 = tpu.matmul %4, %20, %cst_19 {dimension_numbers = #tpu.dot_dimension_numbers<[1], [0], [0], [1], [0, 0, 1, 1], [], []>} : vector<8x64xf32>, vector<64x8xf32>, vector<8x8xf32> -> vector<8x8xf32>
    %c0_20 = arith.constant 0 : index
    %c0_21 = arith.constant 0 : index
    %c0_22 = arith.constant 0 : index
    %22 = vector.load %arg8[%c0_20, %c0_21, %c0_22] : memref<1x1x8xf32, #tpu.memory_space<vmem>>, vector<1x1x8xf32>
    %23 = vector.shape_cast %22 : vector<1x1x8xf32> to vector<1x8xf32>
    %24 = vector.broadcast %23 : vector<1x8xf32> to vector<8x8xf32>
    %25 = arith.addf %21, %24 : vector<8x8xf32>
    %26 = tpu.transpose %18, [1, 0] : vector<8x8xf32> -> vector<8x8xf32>
    %cst_23 = arith.constant dense<0.000000e+00> : vector<8x8xf32>
    %27 = tpu.matmul %11, %26, %cst_23 {dimension_numbers = #tpu.dot_dimension_numbers<[1], [0], [0], [1], [0, 0, 1, 1], [], []>} : vector<8x8xf32>, vector<8x8xf32>, vector<8x8xf32> -> vector<8x8xf32>
    %cst_24 = arith.constant 0.353553385 : f32
    %28 = vector.broadcast %cst_24 : f32 to vector<8x8xf32>
    %29 = arith.mulf %27, %28 : vector<8x8xf32>
    %cst_25 = arith.constant dense<0xFF800000> : vector<8xf32>
    %30 = vector.multi_reduction <maximumf>, %29, %cst_25 [1] : vector<8x8xf32> to vector<8xf32>
    %31 = vector.shape_cast %30 : vector<8xf32> to vector<8x1xf32>
    %32 = vector.broadcast %31 : vector<8x1xf32> to vector<8x8xf32>
    %33 = arith.subf %29, %32 : vector<8x8xf32>
    %34 = math.exp %33 : vector<8x8xf32>
    %cst_26 = arith.constant dense<0.000000e+00> : vector<8xf32>
    %35 = vector.multi_reduction <add>, %34, %cst_26 [1] : vector<8x8xf32> to vector<8xf32>
    %36 = vector.shape_cast %35 : vector<8xf32> to vector<8x1xf32>
    %37 = vector.broadcast %36 : vector<8x1xf32> to vector<8x8xf32>
    %38 = arith.divf %34, %37 : vector<8x8xf32>
    %cst_27 = arith.constant dense<0.000000e+00> : vector<8x8xf32>
    %39 = tpu.matmul %38, %25, %cst_27 {dimension_numbers = #tpu.dot_dimension_numbers<[1], [0], [0], [1], [0, 0, 1, 1], [], []>} : vector<8x8xf32>, vector<8x8xf32>, vector<8x8xf32> -> vector<8x8xf32>
    %c0_28 = arith.constant 0 : index
    %c0_29 = arith.constant 0 : index
    %40 = vector.load %arg12[%c0_28, %c0_29] : memref<8x64xf32, #tpu.memory_space<vmem>>, vector<8x64xf32>
    %c0_30 = arith.constant 0 : index
    %c0_31 = arith.constant 0 : index
    %c0_32 = arith.constant 0 : index
    %41 = vector.load %arg9[%c0_30, %c0_31, %c0_32] : memref<1x8x64xf32, #tpu.memory_space<vmem>>, vector<1x8x64xf32>
    %42 = vector.shape_cast %41 : vector<1x8x64xf32> to vector<8x64xf32>
    %cst_33 = arith.constant dense<0.000000e+00> : vector<8x64xf32>
    %43 = tpu.matmul %39, %42, %cst_33 {dimension_numbers = #tpu.dot_dimension_numbers<[1], [0], [0], [1], [0, 0, 1, 1], [], []>} : vector<8x8xf32>, vector<8x64xf32>, vector<8x64xf32> -> vector<8x64xf32>
    %44 = arith.addf %40, %43 : vector<8x64xf32>
    %c0_34 = arith.constant 0 : index
    %c0_35 = arith.constant 0 : index
    %45 = vector.load %arg12[%c0_34, %c0_35] : memref<8x64xf32, #tpu.memory_space<vmem>>, vector<8x64xf32>
    tpu.vector_store %arg12[%c0_34, %c0_35], %44 {strides = array<i32>} : memref<8x64xf32, #tpu.memory_space<vmem>>, vector<8x64xf32>,
    %c7_i32 = arith.constant 7 : i32
    %46 = arith.cmpi eq, %arg1, %c7_i32 : i32
    %47 = arith.extui %46 : i1 to i32
    %c0_i32_36 = arith.constant 0 : i32
    %48 = arith.cmpi ne, %47, %c0_i32_36 : i32
    scf.if %48 {
      %c0_37 = arith.constant 0 : index
      %c0_38 = arith.constant 0 : index
      %49 = vector.load %arg12[%c0_37, %c0_38] : memref<8x64xf32, #tpu.memory_space<vmem>>, vector<8x64xf32>
      %c0_39 = arith.constant 0 : index
      %c0_40 = arith.constant 0 : index
      %50 = vector.load %arg10[%c0_39, %c0_40] : memref<1x64xf32, #tpu.memory_space<vmem>>, vector<1x64xf32>
      %51 = vector.broadcast %50 : vector<1x64xf32> to vector<8x64xf32>
      %52 = arith.addf %49, %51 : vector<8x64xf32>
      %c0_41 = arith.constant 0 : index
      %c0_42 = arith.constant 0 : index
      %c0_43 = arith.constant 0 : index
      %53 = vector.load %arg11[%c0_41, %c0_42, %c0_43] : memref<1x8x64xf32, #tpu.memory_space<vmem>>, vector<1x8x64xf32>
      %54 = vector.shape_cast %53 : vector<1x8x64xf32> to vector<8x64xf32>
      %55 = vector.shape_cast %52 : vector<8x64xf32> to vector<1x8x64xf32>
      tpu.vector_store %arg11[%c0_41, %c0_42, %c0_43], %55 {strides = array<i32>} : memref<1x8x64xf32, #tpu.memory_space<vmem>>, vector<1x8x64xf32>,
    } else {
    }
    return
  }
  func.func @transform_0(%arg0: i32, %arg1: i32) -> (i32, i32, i32) {
    %c0_i32 = arith.constant 0 : i32
    %c0_i32_0 = arith.constant 0 : i32
    %c0_i32_1 = arith.constant 0 : i32
    return %arg0, %c0_i32, %c0_i32_0 : i32, i32, i32
  }
  func.func @transform_1(%arg0: i32, %arg1: i32) -> (i32, i32, i32) {
    %c0_i32 = arith.constant 0 : i32
    %c0_i32_0 = arith.constant 0 : i32
    %c0_i32_1 = arith.constant 0 : i32
    return %arg1, %c0_i32, %c0_i32_0 : i32, i32, i32
  }
  func.func @transform_2(%arg0: i32, %arg1: i32) -> (i32, i32, i32) {
    %c0_i32 = arith.constant 0 : i32
    %c0_i32_0 = arith.constant 0 : i32
    %c0_i32_1 = arith.constant 0 : i32
    return %arg1, %c0_i32, %c0_i32_0 : i32, i32, i32
  }
  func.func @transform_3(%arg0: i32, %arg1: i32) -> (i32, i32, i32) {
    %c0_i32 = arith.constant 0 : i32
    %c0_i32_0 = arith.constant 0 : i32
    %c0_i32_1 = arith.constant 0 : i32
    return %arg1, %c0_i32, %c0_i32_0 : i32, i32, i32
  }
  func.func @transform_4(%arg0: i32, %arg1: i32) -> (i32, i32, i32) {
    %c0_i32 = arith.constant 0 : i32
    %c0_i32_0 = arith.constant 0 : i32
    %c0_i32_1 = arith.constant 0 : i32
    return %arg1, %c0_i32, %c0_i32_0 : i32, i32, i32
  }
  func.func @transform_5(%arg0: i32, %arg1: i32) -> (i32, i32, i32) {
    %c0_i32 = arith.constant 0 : i32
    %c0_i32_0 = arith.constant 0 : i32
    %c0_i32_1 = arith.constant 0 : i32
    return %arg1, %c0_i32, %c0_i32_0 : i32, i32, i32
  }
  func.func @transform_6(%arg0: i32, %arg1: i32) -> (i32, i32, i32) {
    %c0_i32 = arith.constant 0 : i32
    %c0_i32_0 = arith.constant 0 : i32
    %c0_i32_1 = arith.constant 0 : i32
    return %arg1, %c0_i32, %c0_i32_0 : i32, i32, i32
  }
  func.func @transform_7(%arg0: i32, %arg1: i32) -> (i32, i32, i32) {
    %c0_i32 = arith.constant 0 : i32
    %c0_i32_0 = arith.constant 0 : i32
    %c0_i32_1 = arith.constant 0 : i32
    return %arg1, %c0_i32, %c0_i32_0 : i32, i32, i32
  }
  func.func @transform_8(%arg0: i32, %arg1: i32) -> (i32, i32) {
    %c0_i32 = arith.constant 0 : i32
    %c0_i32_0 = arith.constant 0 : i32
    %c0_i32_1 = arith.constant 0 : i32
    return %c0_i32, %c0_i32_0 : i32, i32
  }
  func.func @transform_9(%arg0: i32, %arg1: i32) -> (i32, i32, i32) {
    %c0_i32 = arith.constant 0 : i32
    %c0_i32_0 = arith.constant 0 : i32
    %c0_i32_1 = arith.constant 0 : i32
    return %arg0, %c0_i32, %c0_i32_0 : i32, i32, i32
  }
}

</mosaic_0001>

<bundles_post_ra>
// kernel: tpu_custom_call.1
= control target key start
LH: loop header
LB: loop body
LE: loop exit
PB: predicated region body
PF: predicated region fallthrough
CT: control target
= control target key end

     0   :  { %s1803_s0 = inlined_call_operand.vmem [shape: f32[2,8,64], index: 0, kind: input, shape index: {}]   ;;  %s1804_s1 = inlined_call_operand.vmem [shape: f32[8,64,8], index: 1, kind: input, shape index: {}]   ;;  %s1805_s2 = inlined_call_operand.vmem [shape: f32[8,64,8], index: 2, kind: input, shape index: {}]   ;;  %s1806_s3 = inlined_call_operand.vmem [shape: f32[8,64,8], index: 3, kind: input, shape index: {}]   ;;  %s1807_s4 = inlined_call_operand.vmem [shape: f32[8,1,8], index: 4, kind: input, shape index: {}]   ;;  %s1808_s5 = inlined_call_operand.vmem [shape: f32[8,1,8], index: 5, kind: input, shape index: {}]   ;;  %s1809_s6 = inlined_call_operand.vmem [shape: f32[8,1,8], index: 6, kind: input, shape index: {}]   ;;  %s1810_s7 = inlined_call_operand.vmem [shape: f32[8,8,64], index: 7, kind: input, shape index: {}]   ;;  %s1811_s8 = inlined_call_operand.vmem [shape: f32[1,64], index: 8, kind: input, shape index: {}]   ;;  %s1812_s9 = inlined_call_operand.hbm [shape: f32[2,8,64], index: 9, kind: output, shape index: {}]  }
   0x1   :  { %1825 = sst [smem:[#allocation16_spill]] %s1803_s0 }
   0x2   :  { %1826 = sst [smem:[#allocation17_spill]] %s1804_s1 }
   0x3   :  { %1827 = sst [smem:[#allocation18_spill]] %s1805_s2 }
   0x4   :  { %1828 = sst [smem:[#allocation19_spill]] %s1812_s9 }
   0x5   :  { %14 = vsyncpa [#allocation4], 0 }
   0x6   :  { %16 = vsyncpa [#allocation4 + $0x1], 0  ;;  %s1542_s30 = smov 0   ;;  %s1544_s10 = smov 0  }
   0x7   :  { %s1546_s11 = smov 0   ;;  %s1548_s12 = smov 0  }
   0x8   :  { %s1550_s13 = smov 0   ;;  %s1552_s14 = smov 0  }
   0x9   :  { %s1554_s15 = smov 0   ;;  %s1556_s16 = smov 0  }
   0xa LB: > { %1829 = sst [smem:[#allocation6_spill]] %s1457_s30  ;;  %s1137_s17 = sadd.s32 4294967295, %s1485_s16   ;;  %s1485_s16 = sphi %s1556_s16, %s22_s16   ;;  %s1481_s15 = sphi %s1554_s15, %s1856_s15   ;;  %s1477_s14 = sphi %s1552_s14, %s1855_s14   ;;  %s1473_s13 = sphi %s1550_s13, %s1854_s13   ;;  %s1469_s12 = sphi %s1548_s12, %s1853_s12   ;;  %s1465_s11 = sphi %s1546_s11, %s1852_s11   ;;  %s1461_s10 = sphi %s1544_s10, %s1858_s10   ;;  %s1457_s30 = sphi %s1542_s30, %s1857_s30  }
   0xb   : > { %1830 = sst [smem:[#allocation7_spill]] %s1465_s11  ;;  %s1138_s18 = sadd.s32 4294967294, %s1485_s16  }
   0xc   : > { %1831 = sst [smem:[#allocation8_spill]] %s1477_s14  ;;  %s31_s19 = sadd.s32 1, %s1477_s14 }
   0xd   : > { %1832 = sst [smem:[#allocation9_spill]] %s1481_s15  ;;  %p32_p0 = scmp.ge.s32.totalorder %s31_s19, 8 }
   0xe   : > { %1833 = sst [smem:[#allocation10_spill]] %s1485_s16  ;;  %s34_s20 = sadd.s32 1, %s1481_s15 }
   0xf   : > { %p280_p1 = scmp.ne.s32.totalorder %s1465_s11, %s1461_s10  ;;  %p281_p2 = scmp.eq.s32.totalorder %s1137_s17, 15 }
  0x10   : > { %s1860_s19 = smov (%p32_p0, %s31_s19), 0  ;;  %s1862_s20 = smov (!%p32_p0, %s34_s20), %s1481_s15 }
  0x11   : > { %1834 = sst [smem:[#allocation11_spill]] %s1860_s19  ;;  %p1591_p3 = por %p281_p2, %p280_p1 }
  0x12   : > { %p286_p4 = scmp.ne.s32.totalorder %s1461_s10, %s1457_s30  ;;  %p36_p5 = scmp.ge.s32.totalorder %s1862_s20, 2 }
  0x13   : > { %s1835_s21 = scalar_select %p1591_p3, 1, 0 }
  0x14   : > { %p287_p6 = scmp.eq.s32.totalorder %s1138_s18, 15  ;;  %p1141_p7 = scmp.ge.s32.totalorder %s1485_s16, 1 }
  0x15   : > { %1836 = sst [smem:[#allocation12_spill]] %s1835_s21  ;;  %p364_p8 = scmp.lt.s32.totalorder %s1485_s16, 17 }
  0x16   : > { %s1864_s20 = smov (%p36_p5, %s1862_s20), 0  ;;  %p1601_p9 = por %p287_p6, %p286_p4 }
  0x17   : > { %1837 = sst [smem:[#allocation13_spill]] %s1864_s20  ;;  %p365_p10 = pnand %p1141_p7, %p364_p8 }
  0x18   : > { %s1838_s22 = scalar_select %p1601_p9, 1, 0 }
  0x19   : > { %s267_s23 = ssub.s32 %s1481_s15, %s1864_s20  ;;  %s270_s24 = sadd.s32 1, %s1465_s11 }
  0x1a   : > { %1839 = sst [smem:[#allocation14_spill]] %s1838_s22  ;;  %p268_p11 = scmp.eq.s32.totalorder %s267_s23, 0 }
  0x1b   : > { %368 = sbr.rel (%p365_p10) target bundleno = 1270 (0x4f6), region = 56  ;;  %s1814_s26 = sand.u32 (!%p365_p10), 1, %s1461_s10  }
  0x1c   : > { %s1609_s25 = scalar_select %p268_p11, %s1465_s11, %s270_s24  }
  0x1d   : > { %p427_p12 = scmp.lt.s32.totalorder (!%p365_p10), %s1473_s13, 1  ;;  %s1615_s27 = sshll.u32 (!%p365_p10), %s1814_s26, 3 }
  0x1e   : > { %1840 = sst [smem:[#allocation15_spill]] %s1609_s25  ;;  %p431_p13 = scmp.lt.s32.totalorder (!%p365_p10), %s1469_s12, 7 }
  0x1f   : > { %s1841_s0 = sld [smem:[#allocation16_spill]] (!%p365_p10)  ;;  %s1842_s1 = sld [smem:[#allocation17_spill]] (!%p365_p10) }
  0x20   : > { %s1843_s2 = sld [smem:[#allocation18_spill]] (!%p365_p10)  ;;  %s426_s30 = scalar_lea.vmem (!%p365_p10), [#allocation3], %s1615_s27 }
  0x21   : > { %p1151_p0 = scmp.ne.s32.totalorder (!%p365_p10), %s1469_s12, 0 }
  0x22   : > { %s428_s28 = scalar_select %p427_p12, %s1473_s13, 1 }
  0x23   : > { %s1620_s29 = scalar_select %p431_p13, %s1469_s12, 7 }
  0x24   : > { %s1143_s17 = sshll.u32 %s428_s28, 3  ;;  %462 = sbr.rel (%p1151_p0) target bundleno = 43 (0x2b), region = 60  ;;  %vm463_vm0 = vcmask (!%p1151_p0), 523264   ;;  %v1487_v0 = vmov (!%p1151_p0), 0.0  }
  0x25   : > { %s1625_s24 = scalar_lea.vmem %s1841_s0, %s1143_s17  ;;  %s1168_s20 = sshll.u32 %s1620_s29, 6  ;;  %464 = vst.msk [vmem:[#allocation2] sm:$0xff] (!%p1151_p0), %vm463_vm0, %v1487_v0 }
  0x26   : > { %s1631_s15 = scalar_lea.vmem %s1842_s1, %s1168_s20  ;;  %s1636_s11 = scalar_lea.vmem %s1843_s2, %s1168_s20 }
  0x27   : > { %s1641_s28 = scalar_lea.vmem %s1806_s3, %s1168_s20  ;;  %s448_s17 = scalar_lea.vmem %s1807_s4, %s1620_s29 }
  0x28   : > { %s451_s19 = scalar_lea.vmem %s1808_s5, %s1620_s29  ;;  %s454_s9 = scalar_lea.vmem %s1809_s6, %s1620_s29 }
  0x29   : > { %s1150_s14 = sshll.u32 %s1620_s29, 3 }
  0x2a   : > { %s1659_s21 = scalar_lea.vmem %s1810_s7, %s1150_s14 }
  0x2b PF: > { %v555_v1 = vld [vmem:[%s1636_s11] sm:$0xff]  ;;  %v556_v2 = vld [vmem:[%s1636_s11 + $0x8] sm:$0xff]  ;;  %v1488_v4 = vmov 0.0|0.0   ;;  %v557_v7 = vld [vmem:[%s1636_s11 + $0x10] sm:$0xff]  ;;  %vm1489_vm1 = vmmov 0   ;;  %v1490_v12 = vmov 0.0  }
  0x2c   : > { %v466_v3 = vld [vmem:[%s1631_s15] sm:$0xff]  ;;  %1288 = vmatprep.subr.bf16.mxu1 %v1488_v4  ;;  %v1289_v5 = vpack.c.bf16 %v556_v2, %v555_v1  ;;  %1276 = vmatprep.subr.bf16.mxu0 %v1488_v4  ;;  %v467_v6 = vld [vmem:[%s1631_s15 + $0x8] sm:$0xff]  ;;  %v558_v8 = vld [vmem:[%s1636_s11 + $0x18] sm:$0xff]  ;;  %vm481_vm2 = vcmask 523264   ;;  %vm725_vm3 = vcmask 64512   ;;  %p1162_p1 = scmp.ne.s32.totalorder %s1469_s12, 7 }
  0x2d   : > { %v1277_v9 = vpack.c.bf16 %v467_v6, %v466_v3  ;;  %v468_v10 = vld [vmem:[%s1631_s15 + $0x10] sm:$0xff]  ;;  %v469_v11 = vld [vmem:[%s1631_s15 + $0x18] sm:$0xff]  ;;  %1239 = vmatprep.mubr.msk.f32.mxu1 %vm1489_vm1, %v1490_v12  ;;  %1220 = vmatprep.mubr.msk.f32.mxu0 %vm1489_vm1, %v1490_v12  ;;  %v1292_v13 = vpack.c.bf16 %v558_v8, %v557_v7  ;;  %v559_v15 = vld [vmem:[%s1636_s11 + $0x20] sm:$0xff] }
  0x2e   : > { %1290 = vmatpush3.bf16.msra.mxu1 %v1289_v5  ;;  %v1280_v14 = vpack.c.bf16 %v469_v11, %v468_v10  ;;  %v560_v16 = vld [vmem:[%s1636_s11 + $0x28] sm:$0xff]  ;;  %v470_v17 = vld [vmem:[%s1631_s15 + $0x20] sm:$0xff]  ;;  %v561_v21 = vld [vmem:[%s1636_s11 + $0x30] sm:$0xff] }
  0x2f   : > { %1278 = vmatpush3.bf16.msra.mxu0 %v1277_v9  ;;  %1291 = vmatprep.subr.bf16.mxu1 %v1488_v4  ;;  %v471_v18 = vld [vmem:[%s1631_s15 + $0x28] sm:$0xff]  ;;  %v1295_v19 = vpack.c.bf16 %v560_v16, %v559_v15  ;;  %v562_v22 = vld [vmem:[%s1636_s11 + $0x38] sm:$0xff]  ;;  %v472_v23 = vld [vmem:[%s1631_s15 + $0x30] sm:$0xff] }
  0x30   : > { %1279 = vmatprep.subr.bf16.mxu0 %v1488_v4  ;;  %v1283_v20 = vpack.c.bf16 %v471_v18, %v470_v17  ;;  %v473_v24 = vld [vmem:[%s1631_s15 + $0x38] sm:$0xff]  ;;  %v1298_v25 = vpack.c.bf16 %v562_v22, %v561_v21  ;;  %v465_v27 = vld [vmem:[%s1625_s24] sm:$0xff]  ;;  %v641_v37 = vld [vmem:[%s1641_s28 + $0x8] sm:$0xff] }
  0x31   : > { %v1286_v26 = vpack.c.bf16 %v473_v24, %v472_v23  ;;  %v1154_v28 = vld [vmem:[%s451_s19] ss:$0 sm:$0xff]  ;;  %v642_v38 = vld [vmem:[%s1641_s28 + $0x10] sm:$0xff]  ;;  %v643_v40 = vld [vmem:[%s1641_s28 + $0x18] sm:$0xff] }
  0x32   : > { %1293 = vmatpush3.bf16.msra.mxu1 %v1292_v13  ;;  %v1152_v29 = vld [vmem:[%s448_s17] ss:$0 sm:$0xff]  ;;  %v1304_v41 = vpack.c.bf16 %v643_v40, %v642_v38  ;;  %v645_v43 = vld [vmem:[%s1641_s28 + $0x28] sm:$0xff]  ;;  %v646_v45 = vld [vmem:[%s1641_s28 + $0x30] sm:$0xff] }
  0x33   : > { %1281 = vmatpush3.bf16.msra.mxu0 %v1280_v14  ;;  %1294 = vmatprep.subr.bf16.mxu1 %v1488_v4  ;;  %v640_v36 = vld [vmem:[%s1641_s28] sm:$0xff]  ;;  %v647_v46 = vld [vmem:[%s1641_s28 + $0x38] sm:$0xff] }
  0x34   : > { %1282 = vmatprep.subr.bf16.mxu0 %v1488_v4  ;;  %v1301_v39 = vpack.c.bf16 %v641_v37, %v640_v36  ;;  %v644_v42 = vld [vmem:[%s1641_s28 + $0x20] sm:$0xff]  ;;  %v1310_v47 = vpack.c.bf16 %v647_v46, %v646_v45 }
  0x35   : > { %v1307_v44 = vpack.c.bf16 %v645_v43, %v644_v42  ;;  %v1156_v58 = vld [vmem:[%s454_s9] ss:$0 sm:$0xff] }
  0x36   : > { %1296 = vmatpush3.bf16.msra.mxu1 %v1295_v19  ;;  %v888_v0 = vld [vmem:[%s1659_s21] sm:$0xff] }
  0x37   : > { %1284 = vmatpush3.bf16.msra.mxu0 %v1283_v20  ;;  %1297 = vmatprep.subr.bf16.mxu1 %v1488_v4  ;;  %v887_v3 = vld [vmem:[#allocation2] sm:$0xff] }
  0x38   : > { %1285 = vmatprep.subr.bf16.mxu0 %v1488_v4  ;;  %v1163_v8 = vld [vmem:[%s1811_s8] ss:$0 sm:$0xff] (!%p1162_p1) }
  0x3a   : > { %1299 = vmatpush3.bf16.msra.mxu1 %v1298_v25 }
  0x3b   : > { %1287 = vmatpush3.bf16.msra.mxu0 %v1286_v26  ;;  %1261 = vmatprep.subr.mxu1 %v1490_v12 }
  0x3c   : > { %1300 = vmatprep.subr.bf16.mxu0 %v1488_v4 }
  0x3d   : > { %1240 = vmatmul.mubr.msk.f32.vlgmr.msra.gmra.mrb[0].mxu1 %vm481_vm2, %v465_v27 }
  0x3e   : > { %1221 = vmatmul.mubr.msk.f32.vlgmr.msra.gmra.mrb[0].mxu0 %vm481_vm2, %v465_v27  ;;  %1263 = vmatprep.mubr.msk.f32.mxu1 %vm1489_vm1, %v1490_v12 }
  0x3f   : > { %1258 = vmatprep.mubr.msk.f32.mxu0 %vm1489_vm1, %v1490_v12  ;;  %1302 = vmatpush3.bf16.msra.mxu0 %v1301_v39 }
  0x40   : > { %1303 = vmatprep.subr.bf16.mxu0 %v1488_v4 }
  0x43   : > { %1305 = vmatpush3.bf16.msra.mxu0 %v1304_v41 }
  0x44   : > { %1306 = vmatprep.subr.bf16.mxu0 %v1488_v4 }
  0x47   : > { %1308 = vmatpush3.bf16.msra.mxu0 %v1307_v44 }
  0x48   : > { %1309 = vmatprep.subr.bf16.mxu0 %v1488_v4 }
  0x4b   : > { %1311 = vmatpush3.bf16.msra.mxu0 %v1310_v47 }
  0x4e   : > { %1259 = vmatmul.mubr.msk.f32.vlgmr.msra.gmra.mrb[2].mxu0 %vm481_vm2, %v465_v27 }
 0x110   : > { %v636_v30 = vpop.f32.mrb[0].mxu1 }
 0x111   : > { %v637_v31 = vadd.f32 %v1154_v28, %v636_v30  ;;  %v1241_v32 = vpop.f32.mrb[1].mxu1  ;;  %v551_v33 = vpop.f32.mrb[0].mxu0 }
 0x112   : > { %v552_v34 = vadd.f32 %v1152_v29, %v551_v33  ;;  %v1222_v35 = vpop.f32.mrb[1].mxu0 }
 0x113   : > { %1262 = vmatpush3.xpose.msk.msra.mxu1 %vm725_vm3, %v637_v31 }
 0x114   : > { %1266 = vmatprep.subr.mxu1 %v1490_v12 }
 0x116   : > { %1264 = vmatmul.mubr.msk.f32.vlgmr.msra.gmra.mrb[2].mxu1 %vm725_vm3, %v552_v34 }
 0x117   : > { %1268 = vmatprep.mubr.msk.f32.mxu1 %vm1489_vm1, %v1490_v12 }
 0x121   : > { %v721_v57 = vpop.f32.mrb[2].mxu0 }
 0x122   : > { %v1260_v59 = vpop.f32.mrb[3].mxu0  ;;  %v722_v60 = vadd.f32 %v1156_v58, %v721_v57 }
 0x124   : > { %1267 = vmatpush3.msra.mxu1 %v722_v60 }
 0x125   : > { %1271 = vmatprep.subr.mxu1 %v1490_v12 }
 0x1e9   : > { %v798_v48 = vpop.f32.mrb[2].mxu1 }
 0x1ea   : > { %v802_v49 = vmul.f32 0.35355338, %v798_v48  ;;  %v1265_v50 = vpop.f32.mrb[3].mxu1 }
 0x1ec   : > { %v803_v51 = vsel %vm725_vm3, %v802_v49, -inf }
 0x1ed   : > { %804 = vmax.xlane.f32.xlu0 %v803_v51 }
 0x27a   : > { %v805_v52 = vpop.xlane.xlu0 %804 }
 0x27b   : > { %v806_v53 = vsub.f32 %v802_v49, %v805_v52 }
 0x27d   : > { %v807_v54 = vmul.f32 1.442695, %v806_v53 }
 0x27f   : > { %1387 = vpow2.f32 %v807_v54 }
 0x289   : > { %v1388_v55 = vpop.eup %1387 }
 0x28a   : > { %v809_v56 = vsel %vm725_vm3, %v1388_v55, 0.0 }
 0x28b   : > { %810 = vadd.xlane.f32.xlu0 %v809_v56 }
 0x318   : > { %v811_v61 = vpop.xlane.xlu0 %810 }
 0x319   : > { %1389 = vrcp.f32 %v811_v61 }
 0x323   : > { %v1390_v62 = vpop.eup %1389 }
 0x324   : > { %v813_v63 = vmul.f32 %v1390_v62, %v1388_v55 }
 0x326   : > { %1269 = vmatmul.mubr.msk.f32.vlgmr.msra.gmra.mrb[4].mxu1 %vm725_vm3, %v813_v63 }
 0x327   : > { %1272 = vmatpush3.msra.mxu1 %v888_v0  ;;  %1273 = vmatprep.mubr.msk.f32.mxu1 %vm1489_vm1, %v1490_v12 }
 0x3f9   : > { %v883_v1 = vpop.f32.mrb[4].mxu1 }
 0x3fa   : > { %v1270_v2 = vpop.f32.mrb[5].mxu1  ;;  %1274 = vmatmul.mubr.msk.f32.vlgmr.msra.gmra.mrb[6].mxu1 %vm725_vm3, %v883_v1 }
 0x4ca   : > { %967 = sbr.rel (%p1162_p1) target bundleno = 1243 (0x4db), region = 64 }
 0x4cd   : > { %v958_v4 = vpop.f32.mrb[6].mxu1 }
 0x4ce   : > { %v962_v5 = vadd.f32 %v958_v4, %v887_v3  ;;  %v1275_v6 = vpop.f32.mrb[7].mxu1 }
 0x4d0   : > { %963 = vst.msk [vmem:[#allocation2] sm:$0xff] %vm481_vm2, %v962_v5 }
 0x4d7   : > { %v968_v7 = vld [vmem:[#allocation2] sm:$0xff] }
 0x4d8   : > { %v976_v9 = vadd.f32 %v1163_v8, %v968_v7 }
 0x4da   : > { %977 = vst.msk [vmem:[%s426_s30] sm:$0xff] %vm481_vm2, %v976_v9 }
 0x4db PF: > { %s1165_s22 = sshll.u32 %s1473_s13, 7  ;;  %s1845_s12 = sld [smem:[#allocation19_spill]] }
 0x4dc   : > { %s992_s17 = sshll.u32 %s426_s30, 4  ;;  %s1847_s23 = sand.u32 1, %s1461_s10   ;;  %s993_s17 = int_to_ptr.vmem [resolvable:$true] %s992_s17 }
 0x4dd   : > { %s979_s19 = scalar_lea.sflag [#allocation4], %s1847_s23  ;;  %s1391_s26 = scalar_lea.vmem %s993_s17, 128 }
 0x4de   : > { %p1392_p2 = scmp.ne.s32.totalorder %s993_s17, %s1391_s26  ;;  %s1491_s14 = smov [#allocation3]  }
 0x4df   : > { %s1395_s25 = sshll.u32 %s1491_s14, 4  ;;  %s1396_s25 = int_to_ptr.vmem [resolvable:$false] %s1395_s25 }
 0x4e0   : > { %p1393_p4 = pnand %p1392_p2, %p1591_p3  ;;  %s1397_s0 = scalar_lea.vmem %s1396_s25, 256 }
 0x4e1   : > { %s1846_s28 = smov %s1845_s12  ;;  %s1752_s18 = scalar_lea.hbm %s1845_s12, %s1165_s22 }
 0x4e2   : > { %p1394_p5 = pneg %p1393_p4  ;;  %p1398_p6 = scmp.lt.s32.totalorder %s993_s17, %s1396_s25 }
 0x4e3   : > { %p1399_p7 = scmp.lt.s32.totalorder %s1397_s0, %s1391_s26 }
 0x4e5   : > { %p1400_p8 = por %p1399_p7, %p1398_p6 }
 0x4e7   : > { %p1401_p10 = pnand %p1400_p8, %p1394_p5 }
 0x4e9   : > { %1404 = shalt.err (!%p1401_p10)
}
 0x4ea   : > { %s1405_s13 = scalar_lea.hbm %s1752_s18, 128  ;;  %s1409_s1 = scalar_lea.hbm %s1846_s28, 256 }
 0x4eb   : > { %p1406_p11 = scmp.ne.s32.totalorder %s1752_s18, %s1405_s13  ;;  %p1410_p0 = scmp.lt.u32.totalorder %s1752_s18, %s1846_s28 }
 0x4ec   : > { %p1411_p1 = scmp.lt.u32.totalorder %s1409_s1, %s1405_s13  ;;  %p1413_p4 = scmp.lt.u32.totalorder %s1405_s13, %s1752_s18 }
 0x4ed   : > { %p1407_p12 = pnand %p1406_p11, %p1591_p3 }
 0x4ee   : > { %p1412_p2 = por %p1411_p1, %p1410_p0 }
 0x4ef   : > { %p1408_p13 = pneg %p1407_p12 }
 0x4f0   : > { %p1414_p5 = por %p1413_p4, %p1412_p2 }
 0x4f2   : > { %p1415_p6 = pnand %p1414_p5, %p1408_p13 }
 0x4f4   : > { %1418 = shalt.err (!%p1415_p6)
}
 0x4f5   : > { %1312 = dma.vmem_to_hbm [thread:$0]  (%p1591_p3), %s993_s17, 128, %s1752_s18, %s979_s19  }
 0x4f6 PF: > { %s1848_s15 = sld [smem:[#allocation10_spill]]  ;;  %s1849_s16 = sld [smem:[#allocation6_spill]] }
 0x4fc   : > { %p1318_p7 = scmp.ge.s32.totalorder %s1848_s15, 2  ;;  %s1004_s20 = sand.u32 1, %s1849_s16  }
 0x4fd   : > { %s1005_s22 = scalar_lea.sflag [#allocation4], %s1004_s20 }
 0x4fe   : > { %p1315_p8 = pnand %p1318_p7, %p1601_p9 }
 0x500   : > { %1452 = dma.done.wait (!%p1315_p8), %s1005_s22, 128  }
 0x501   : > { %1454 = vsyncadd (!%p1315_p8), %s1005_s22, 4294967168  ;;  %s22_s16 = sadd.s32 1, %s1848_s15   ;;  %s1851_s29 = sld [smem:[#allocation7_spill]] }
 0x502   : > { %p19_p10 = scmp.ge.s32.totalorder %s22_s16, 18   ;;  %s1852_s11 = sld [smem:[#allocation15_spill]] }
 0x503   : > { %s1853_s12 = sld [smem:[#allocation8_spill]]  ;;  %s1854_s13 = sld [smem:[#allocation9_spill]] }
 0x504   : > { %s1855_s14 = sld [smem:[#allocation11_spill]]  ;;  %s1856_s15 = sld [smem:[#allocation13_spill]] }
 0x505   : > { %s1857_s30 = smov %s1461_s10  ;;  %21 = sbr.rel (!%p19_p10) target bundleno = 10 (0xa), region = 120 }
 0x507   : > { %s1858_s10 = smov %s1851_s29 }
 0x50c   :  { %1010 = vsyncpa [#allocation4], 1 }
 0x50d   :  { %1012 = vsyncpa [#allocation4 + $0x1], 1 }

</bundles_post_ra>
